<compile_context>
chip_gen: v7x
topology: tpu7x:2x2x1
jax: 0.10.0
libtpu: 0.0.40
codegen_flags: <defaults>
</compile_context>

<pallas_src>
import functools

import jax
import jax.numpy as jnp
from jax.experimental import pallas as pl
from jax.experimental.pallas import tpu as pltpu


def _round_up(a, b):
    return ((a + b - 1) // b) * b


def _linear_inr_kernel(x_ref, w_ref, b_ref, o_ref, *, omega):
    # MXU matmul, f32 accumulation.
    y = jnp.dot(x_ref[...], w_ref[...], preferred_element_type=jnp.float32)
    y = y + b_ref[...]                                   # (tm, tn) + (1, tn)
    # FKAN activation, EUP-heavy epilogue:
    t = jnp.tanh(omega * y)                              # EUP tanh
    s = pl.reciprocal(1.0 + jnp.exp(-y), approx=True)    # EUP exp + EUP rcp (sigmoid)
    o_ref[...] = ((y + t) * s).astype(o_ref.dtype)


def _choose_tiles(M, K, N, vmem_budget=32 << 20):
    """Pick padded shapes + (tm, tn) tiles that stay under the VMEM budget."""
    Kp = _round_up(K, 128)
    Np = _round_up(N, 128)

    def budget(tm, tn):
        # double-buffered f32 tiles: x (tm,Kp), w (Kp,tn), bias (1,tn), out (tm,tn)
        return 2 * 4 * (tm * Kp + Kp * tn + tn + tm * tn)

    # lane-dense N tile, shrink until it divides Np and fits the budget
    tn = min(Np, 512)
    while tn > 128 and (Np % tn or budget(256, tn) > vmem_budget):
        tn -= 128

    # largest row tile that fits the budget (cap 256 rows)
    tm_cap = 256
    while tm_cap > 8 and budget(tm_cap, tn) > vmem_budget:
        tm_cap -= 8

    M8 = _round_up(max(M, 1), 8)
    if 8 < M8 <= tm_cap:
        # small batch: split into ~2 row tiles so both v7x TensorCores get work
        tm = _round_up(pl.cdiv(M8, 2), 8)
    else:
        tm = min(tm_cap, M8)
    Mp = _round_up(M8, tm)
    return Mp, Kp, Np, tm, tn


def linear_inr_layer(x, weight_t, bias, *, omega=30.0):
    """x: [M, K], weight_t: [K, N] (pre-transposed), bias: [N] or [1, N] -> [M, N]."""
    M, K = x.shape
    K2, N = weight_t.shape
    assert K == K2
    bias = bias.reshape(1, N)

    Mp, Kp, Np, tm, tn = _choose_tiles(M, K, N)

    # Zero-pad to tile-aligned shapes (safe: padded K contributes 0 to the dot,
    # padded M/N rows/cols are sliced off below).
    xp = x if (M, K) == (Mp, Kp) else jnp.pad(x, ((0, Mp - M), (0, Kp - K)))
    wp = weight_t if (K, N) == (Kp, Np) else jnp.pad(weight_t, ((0, Kp - K), (0, Np - N)))
    bp = bias if N == Np else jnp.pad(bias, ((0, 0), (0, Np - N)))

    kernel = functools.partial(_linear_inr_kernel, omega=float(omega))

    cost = pl.CostEstimate(
        flops=2 * Mp * Kp * Np + 6 * Mp * Np,
        transcendentals=3 * Mp * Np,
        bytes_accessed=4 * (Mp * Kp + Kp * Np + Np + Mp * Np),
    )

    out = pl.pallas_call(
        kernel,
        out_shape=jax.ShapeDtypeStruct((Mp, Np), x.dtype),
        grid_spec=pltpu.PrefetchScalarGridSpec(
            num_scalar_prefetch=0,
            grid=(Mp // tm, Np // tn),
            in_specs=[
                pl.BlockSpec((tm, Kp), lambda i, j: (i, 0)),  # x row tile
                pl.BlockSpec((Kp, tn), lambda i, j: (0, j)),  # weight col tile
                pl.BlockSpec((1, tn), lambda i, j: (0, j)),   # bias col tile
            ],
            out_specs=pl.BlockSpec((tm, tn), lambda i, j: (i, j)),
        ),
        compiler_params=pltpu.CompilerParams(
            dimension_semantics=("parallel", "parallel"),
            vmem_limit_bytes=48 << 20,
        ),
        cost_estimate=cost,
    )(xp, wp, bp)

    return out[:M, :N]


def init_params(key, input_dim, output_dim, omega=30.0, dtype=jnp.float32):
    """Deterministic init matching LinearINRLayer.__init__ semantics."""
    kw, kb = jax.random.split(key)
    w_bound = jnp.sqrt(6.0 / input_dim) / omega
    # torch stores weight as [out, in]; we keep the transpose [in, out].
    weight_t = jax.random.uniform(
        kw, (input_dim, output_dim), dtype=dtype, minval=-w_bound, maxval=w_bound
    )
    # nn.Linear default bias init: U(-1/sqrt(in), 1/sqrt(in))
    b_bound = 1.0 / jnp.sqrt(input_dim)
    bias = jax.random.uniform(
        kb, (1, output_dim), dtype=dtype, minval=-b_bound, maxval=b_bound
    )
    return weight_t, bias


def reference(x, weight_t, bias, omega=30.0):
    y = x @ weight_t + bias
    return (y + jnp.tanh(omega * y)) * jax.nn.sigmoid(y)


if __name__ == "__main__":
    key = jax.random.PRNGKey(0)
    k_x, k_p = jax.random.split(key)

    batch, input_dim, output_dim = 16, 32, 64
    omega = 30.0

    x = jax.random.normal(k_x, (batch, input_dim), dtype=jnp.float32)
    weight_t, bias = init_params(k_p, input_dim, output_dim, omega=omega)

    out = linear_inr_layer(x, weight_t, bias, omega=omega)
    out = jax.block_until_ready(out)

    ref = reference(x, weight_t, bias, omega=omega)
    assert out.shape == (batch, output_dim)
    # approx-reciprocal sigmoid => slightly looser tolerance than pure f32
    assert jnp.allclose(out, ref, atol=2e-3, rtol=2e-3), "mismatch vs reference"

    print("KERNEL_OK")
</pallas_src>

<mosaic_0001>
module attributes {stable_mosaic.version = 11 : i64} {
  func.func @_linear_inr_kernel(%arg0: i32, %arg1: i32, %arg2: memref<8x128xf32, #tpu.memory_space<vmem>>, %arg3: memref<128x128xf32, #tpu.memory_space<vmem>>, %arg4: memref<1x128xf32, #tpu.memory_space<vmem>>, %arg5: memref<8x128xf32, #tpu.memory_space<vmem>>) attributes {dimension_semantics = [#tpu.dimension_semantics<parallel>, #tpu.dimension_semantics<parallel>], iteration_bounds = array<i64: 2, 1>, scalar_prefetch = 0 : i64, scratch_operands = 0 : i64, tpu.core_type = #tpu.core_type<tc>, window_params = [{transform_indices = @transform_0, window_bounds = array<i64: 8, 128>}, {transform_indices = @transform_1, window_bounds = array<i64: 128, 128>}, {transform_indices = @transform_2, window_bounds = array<i64: 1, 128>}, {transform_indices = @transform_3, window_bounds = array<i64: 8, 128>}]} {
    %c0 = arith.constant 0 : index
    %c0_0 = arith.constant 0 : index
    %0 = vector.load %arg2[%c0, %c0_0] : memref<8x128xf32, #tpu.memory_space<vmem>>, vector<8x128xf32>
    %c0_1 = arith.constant 0 : index
    %c0_2 = arith.constant 0 : index
    %1 = vector.load %arg3[%c0_1, %c0_2] : memref<128x128xf32, #tpu.memory_space<vmem>>, vector<128x128xf32>
    %cst = arith.constant dense<0.000000e+00> : vector<8x128xf32>
    %2 = tpu.matmul %0, %1, %cst {dimension_numbers = #tpu.dot_dimension_numbers<[1], [0], [0], [1], [0, 0, 1, 1], [], []>} : vector<8x128xf32>, vector<128x128xf32>, vector<8x128xf32> -> vector<8x128xf32>
    %c0_3 = arith.constant 0 : index
    %c0_4 = arith.constant 0 : index
    %3 = vector.load %arg4[%c0_3, %c0_4] : memref<1x128xf32, #tpu.memory_space<vmem>>, vector<1x128xf32>
    %4 = vector.broadcast %3 : vector<1x128xf32> to vector<8x128xf32>
    %5 = arith.addf %2, %4 : vector<8x128xf32>
    %cst_5 = arith.constant 3.000000e+01 : f32
    %6 = vector.broadcast %cst_5 : f32 to vector<8x128xf32>
    %7 = arith.mulf %6, %5 : vector<8x128xf32>
    %8 = math.tanh %7 : vector<8x128xf32>
    %cst_6 = arith.constant 0.000000e+00 : f32
    %9 = vector.broadcast %cst_6 : f32 to vector<8x128xf32>
    %10 = arith.subf %9, %5 : vector<8x128xf32>
    %11 = math.exp %10 : vector<8x128xf32>
    %cst_7 = arith.constant 1.000000e+00 : f32
    %12 = vector.broadcast %cst_7 : f32 to vector<8x128xf32>
    %13 = arith.addf %12, %11 : vector<8x128xf32>
    %14 = tpu.reciprocal %13 {approx = true} : vector<8x128xf32> -> vector<8x128xf32>
    %15 = arith.addf %5, %8 : vector<8x128xf32>
    %16 = arith.mulf %15, %14 : vector<8x128xf32>
    %c0_8 = arith.constant 0 : index
    %c0_9 = arith.constant 0 : index
    %17 = vector.load %arg5[%c0_8, %c0_9] : memref<8x128xf32, #tpu.memory_space<vmem>>, vector<8x128xf32>
    tpu.vector_store %arg5[%c0_8, %c0_9], %16 {strides = array<i32>} : memref<8x128xf32, #tpu.memory_space<vmem>>, vector<8x128xf32>,
    return
  }
  func.func @transform_0(%arg0: i32, %arg1: i32) -> (i32, i32) {
    %c0_i32 = arith.constant 0 : i32
    %c0_i32_0 = arith.constant 0 : i32
    return %arg0, %c0_i32 : i32, i32
  }
  func.func @transform_1(%arg0: i32, %arg1: i32) -> (i32, i32) {
    %c0_i32 = arith.constant 0 : i32
    %c0_i32_0 = arith.constant 0 : i32
    return %c0_i32, %arg1 : i32, i32
  }
  func.func @transform_2(%arg0: i32, %arg1: i32) -> (i32, i32) {
    %c0_i32 = arith.constant 0 : i32
    %c0_i32_0 = arith.constant 0 : i32
    return %c0_i32, %arg1 : i32, i32
  }
  func.func @transform_3(%arg0: i32, %arg1: i32) -> (i32, i32) {
    %c0_i32 = arith.constant 0 : i32
    return %arg0, %arg1 : i32, i32
  }
}

</mosaic_0001>

<bundles_post_ra>
// kernel: tpu_custom_call.1
= control target key start
LH: loop header
LB: loop body
LE: loop exit
PB: predicated region body
PF: predicated region fallthrough
CT: control target
= control target key end

     0   :  { %8 = vsyncpa [#allocation3], 0  ;;  %s1033_s0 = inlined_call_operand.hbm [shape: f32[16,128], index: 0, kind: input, shape index: {}]   ;;  %s1034_s1 = inlined_call_operand.hbm [shape: f32[128,128], index: 1, kind: input, shape index: {}]   ;;  %s1035_s2 = inlined_call_operand.vmem [shape: f32[1,128], index: 2, kind: input, shape index: {}]   ;;  %s1036_s3 = inlined_call_operand.hbm [shape: f32[16,128], index: 3, kind: output, shape index: {}]  }
   0x1   :  { %10 = vsyncpa [#allocation3 + $0x1], 0 }
   0x2   :  { %11 = vsyncpa [#allocation6], 0 }
   0x3   :  { %12 = vsyncpa [#allocation4], 0 }
   0x4   :  { %14 = vsyncpa [#allocation4 + $0x1], 0  ;;  %s809_s12 = smov 0   ;;  %s811_s13 = smov 0  }
   0x5   :  { %s813_s14 = smov 0   ;;  %s815_s15 = smov 0  }
   0x6   :  { %s817_s16 = smov 0   ;;  %s819_s17 = smov 0  }
   0x7 LB: > { %s458_s18 = sadd.s32 4294967295, %s779_s17   ;;  %s459_s19 = sadd.s32 4294967294, %s779_s17   ;;  %s779_s17 = sphi %s819_s17, %s20_s17   ;;  %s775_s16 = sphi %s817_s16, %s1060_s16   ;;  %s771_s15 = sphi %s815_s15, %s1059_s15   ;;  %s767_s14 = sphi %s813_s14, %s1058_s14   ;;  %s763_s13 = sphi %s811_s13, %s1057_s13   ;;  %s759_s12 = sphi %s809_s12, %s1056_s12  }
   0x8   : > { %p52_p0 = scmp.ne.s32.totalorder %s763_s13, %s759_s12  ;;  %p843_p1 = scmp.eq.s32.totalorder %s458_s18, 0 }
   0x9   : > { %p847_p2 = scmp.eq.s32.totalorder %s458_s18, 1  ;;  %p136_p3 = scmp.eq.s32.totalorder %s459_s19, 1 }
   0xa   : > { %s1041_s20 = scalar_select %p843_p1, 1, 0 }
   0xb   : > { %s1042_s21 = scalar_select %p847_p2, 1, 0 }
   0xc   : > { %p853_p4 = por %p843_p1, %p52_p0  ;;  %p460_p5 = scmp.ge.s32.totalorder %s779_s17, 1 }
   0xd   : > { %p858_p6 = por %p136_p3, %p52_p0  ;;  %p143_p7 = scmp.lt.s32.totalorder %s779_s17, 3 }
   0xe   : > { %s1043_s22 = scalar_select %p853_p4, 1, 0 }
   0xf   : > { %s1044_s23 = scalar_select %p858_p6, 1, 0 }
  0x10   : > { %p863_p8 = pnand %p460_p5, %p143_p7  ;;  %s781_s25 = smov [#allocation5]  }
  0x11   : > { %s157_s26 = sshll.u32 %s781_s25, 4  ;;  %s32_s28 = sadd.s32 1, %s775_s16  ;;  %s158_s26 = int_to_ptr.vmem [resolvable:$true] %s157_s26 }
  0x12   : > { %s1045_s24 = scalar_select %p863_p8, 1, 0 }
  0x13   : > { %p559_p9 = pneg %p863_p8  ;;  %s635_s4 = scalar_lea.hbm %s1034_s1, 2048 }
  0x14   : > { %p636_p12 = scmp.ne.s32.totalorder %s1034_s1, %s635_s4  ;;  %p642_p5 = scmp.lt.u32.totalorder %s635_s4, %s1034_s1 }
  0x15   : > { %p872_p11 = pnand %p559_p9, %p843_p1 }
  0x17   : > { %p637_p13 = pneg %p872_p11 }
  0x19   : > { %p638_p0 = pnand %p637_p13, %p636_p12 }
  0x1b   : > { %p639_p3 = pneg %p638_p0 }
  0x1d   : > { %p644_p7 = pnand %p642_p5, %p639_p3 }
  0x1f   : > { %647 = shalt.err (!%p644_p7)
}
  0x20   : > { %s648_s9 = scalar_lea.vmem %s158_s26, 2048  ;;  %p656_p1 = scmp.lt.s32.totalorder %s158_s26, %s158_s26 }
  0x21   : > { %p649_p9 = scmp.ne.s32.totalorder %s158_s26, %s648_s9  ;;  %p657_p4 = scmp.lt.s32.totalorder %s648_s9, %s648_s9 }
  0x23   : > { %p651_p10 = pnand %p649_p9, %p637_p13  ;;  %p658_p8 = por %p657_p4, %p656_p1 }
  0x25   : > { %p652_p6 = pneg %p651_p10 }
  0x27   : > { %p659_p2 = pnand %p658_p8, %p652_p6 }
  0x29   : > { %662 = shalt.err (!%p659_p2)
}
  0x2a   : > { %s782_s10 = smov 128   ;;  %s783_s11 = smov 8  }
  0x2b   : > { %562 = dma.hbm_to_vmem [thread:$0]  (!%p872_p11), %s1034_s1, 2048, %s158_s26, [#allocation6], %s782_s10, %s782_s10, %s783_s11  }
  0x2c   : > { %p34_p1 = scmp.ge.s32.totalorder %s32_s28, 2  ;;  %s39_s25 = sadd.s32 1, %s767_s14 }
  0x2d   : > { %p46_p2 = scmp.ne.s32.totalorder %s767_s14, %s763_s13  ;;  %p47_p4 = scmp.eq.s32.totalorder %s779_s17, 0 }
  0x2e   : > { %s1062_s28 = smov (%p34_p1, %s32_s28), 0  ;;  %p1048_p8 = scmp.ne.s32.totalorder %s1042_s21, 0 }
  0x2f   : > { %p899_p6 = por %p47_p4, %p46_p2  ;;  %s36_s27 = ssub.s32 %s775_s16, %s1062_s28 }
  0x30   : > { %p905_p10 = por %p1048_p8, %p46_p2  ;;  %p572_p12 = scmp.lt.s32.totalorder %s779_s17, 2 }
  0x31   : > { %p37_p11 = scmp.eq.s32.totalorder %s36_s27, 0  ;;  %s177_s26 = sand.u32 1, %s767_s14  }
  0x32   : > { %s464_s4 = sshll.u32 %s177_s26, 3  ;;  %s465_s6 = sshll.u32 %s775_s16, 7 }
  0x33   : > { %s914_s5 = scalar_select %p37_p11, %s767_s14, %s39_s25  }
  0x34   : > { %s920_s9 = scalar_lea.hbm %s1033_s0, %s465_s6  ;;  %s181_s21 = scalar_lea.vmem [#allocation2], %s464_s4 }
  0x35   : > { %s188_s10 = sshll.u32 %s181_s21, 4  ;;  %p926_p13 = pnand %p572_p12, %p899_p6  ;;  %s922_s10 = int_to_ptr.vmem [resolvable:$true] %s188_s10 }
  0x36   : > { %s178_s18 = scalar_lea.sflag [#allocation3], %s177_s26  ;;  %s663_s19 = scalar_lea.hbm %s920_s9, 128 }
  0x37   : > { %p664_p0 = scmp.ne.s32.totalorder %s920_s9, %s663_s19  ;;  %p665_p3 = pneg %p926_p13 }
  0x38   : > { %s668_s4 = scalar_lea.hbm %s1033_s0, 256  ;;  %p669_p9 = scmp.lt.u32.totalorder %s920_s9, %s1033_s0 }
  0x39   : > { %p666_p5 = pnand %p665_p3, %p664_p0  ;;  %p670_p1 = scmp.lt.u32.totalorder %s668_s4, %s663_s19 }
  0x3a   : > { %p672_p4 = scmp.lt.u32.totalorder %s663_s19, %s920_s9 }
  0x3b   : > { %p667_p7 = pneg %p666_p5  ;;  %p671_p2 = por %p670_p1, %p669_p9 }
  0x3d   : > { %p673_p6 = por %p672_p4, %p671_p2 }
  0x3f   : > { %p674_p8 = pnand %p673_p6, %p667_p7 }
  0x41   : > { %677 = shalt.err (!%p674_p8)
}
  0x42   : > { %s678_s26 = scalar_lea.vmem %s922_s10, 128  ;;  %s784_s7 = smov [#allocation2]  }
  0x43   : > { %p679_p12 = scmp.ne.s32.totalorder %s922_s10, %s678_s26  ;;  %s683_s8 = sshll.u32 %s784_s7, 4  ;;  %s684_s8 = int_to_ptr.vmem [resolvable:$false] %s683_s8 }
  0x44   : > { %s685_s21 = scalar_lea.vmem %s684_s8, 256  ;;  %p686_p5 = scmp.lt.s32.totalorder %s922_s10, %s684_s8 }
  0x45   : > { %p681_p11 = pnand %p679_p12, %p665_p3  ;;  %p687_p9 = scmp.lt.s32.totalorder %s685_s21, %s678_s26 }
  0x47   : > { %p682_p0 = pneg %p681_p11  ;;  %p688_p1 = por %p687_p9, %p686_p5 }
  0x49   : > { %p689_p2 = pnand %p688_p1, %p682_p0 }
  0x4b   : > { %692 = shalt.err (!%p689_p2)
}
  0x4c   : > { %566 = dma.hbm_to_vmem [thread:$0]  (!%p926_p13), %s920_s9, 128, %s922_s10, %s178_s18  }
  0x4d   : > { %p1051_p7 = scmp.ne.s32.totalorder %s1045_s24, 0 }
  0x4e   : > { %s958_s19 = sand.u32 (!%p1051_p7), 1, %s763_s13   ;;  %p1052_p3 = scmp.ne.s32.totalorder (!%p1051_p7), %s1043_s22, 0 }
  0x4f   : > { %197 = sbr.rel (%p1051_p7) target bundleno = 383 (0x17f), region = 32  ;;  %s467_s25 = sshll.u32 (!%p1051_p7), %s958_s19, 3 }
  0x50   : > { %s200_s27 = scalar_lea.sflag (!%p1051_p7), [#allocation3], %s958_s19  ;;  %s964_s4 = scalar_lea.vmem (!%p1051_p7), [#allocation2], %s467_s25 }
  0x56   : > { %746 = dma.done.wait (%p1052_p3), %s200_s27, 128  }
  0x57   : > { %748 = vsyncadd (%p1052_p3), %s200_s27, 4294967168  ;;  %p1053_p13 = scmp.ne.s32.totalorder %s1041_s20, 0 }
  0x59   : > { %750 = dma.done.wait (%p1053_p13), [#allocation6], 2048  }
  0x5a   : > { %752 = vsyncadd (%p1053_p13), [#allocation6], 4294965248  ;;  %v785_v0 = vmov 0.0|0.0   ;;  %vm786_vm0 = vmmov 0   ;;  %v787_v1 = vmov 0.0   ;;  %v237_v2 = vld [vmem:[#allocation5] sm:$0xff] }
  0x5b   : > { %527 = vmatprep.subr.bf16.mxu0 %v785_v0  ;;  %524 = vmatprep.mubr.msk.f32.mxu0 %vm786_vm0, %v787_v1  ;;  %v238_v3 = vld [vmem:[#allocation5 + $0x8] sm:$0xff]  ;;  %v239_v4 = vld [vmem:[#allocation5 + $0x10] sm:$0xff]  ;;  %v240_v6 = vld [vmem:[#allocation5 + $0x18] sm:$0xff]  ;;  %s472_s24 = sshll.u32 %s771_s15, 7  ;;  %s232_s9 = scalar_lea.vmem [#allocation7], %s467_s25 }
  0x5c   : > { %v528_v5 = vpack.c.bf16 %v238_v3, %v237_v2  ;;  %v531_v7 = vpack.c.bf16 %v240_v6, %v239_v4  ;;  %v241_v8 = vld [vmem:[#allocation5 + $0x20] sm:$0xff]  ;;  %v242_v9 = vld [vmem:[#allocation5 + $0x28] sm:$0xff]  ;;  %v243_v11 = vld [vmem:[#allocation5 + $0x30] sm:$0xff]  ;;  %s355_s10 = sshll.u32 %s232_s9, 4  ;;  %s984_s29 = scalar_lea.hbm %s1036_s3, %s472_s24  ;;  %s986_s10 = int_to_ptr.vmem [resolvable:$true] %s355_s10 }
  0x5d   : > { %v534_v10 = vpack.c.bf16 %v242_v9, %v241_v8  ;;  %v244_v12 = vld [vmem:[#allocation5 + $0x38] sm:$0xff]  ;;  %v245_v14 = vld [vmem:[#allocation5 + $0x40] sm:$0xff]  ;;  %v246_v15 = vld [vmem:[#allocation5 + $0x48] sm:$0xff]  ;;  %s341_s6 = scalar_lea.sflag [#allocation4], %s958_s19  ;;  %s693_s26 = scalar_lea.vmem %s986_s10, 128 }
  0x5e   : > { %529 = vmatpush3.bf16.msra.mxu0 %v528_v5  ;;  %v537_v13 = vpack.c.bf16 %v244_v12, %v243_v11  ;;  %v540_v16 = vpack.c.bf16 %v246_v15, %v245_v14  ;;  %v247_v17 = vld [vmem:[#allocation5 + $0x50] sm:$0xff]  ;;  %v248_v18 = vld [vmem:[#allocation5 + $0x58] sm:$0xff]  ;;  %v249_v20 = vld [vmem:[#allocation5 + $0x60] sm:$0xff]  ;;  %p694_p4 = scmp.ne.s32.totalorder %s986_s10, %s693_s26  ;;  %s788_s15 = smov [#allocation7]  }
  0x5f   : > { %530 = vmatprep.subr.bf16.mxu0 %v785_v0  ;;  %v543_v19 = vpack.c.bf16 %v248_v18, %v247_v17  ;;  %v250_v21 = vld [vmem:[#allocation5 + $0x68] sm:$0xff]  ;;  %v251_v23 = vld [vmem:[#allocation5 + $0x70] sm:$0xff]  ;;  %v252_v24 = vld [vmem:[#allocation5 + $0x78] sm:$0xff]  ;;  %s697_s7 = sshll.u32 %s788_s15, 4  ;;  %s698_s7 = int_to_ptr.vmem [resolvable:$false] %s697_s7 }
  0x60   : > { %v546_v22 = vpack.c.bf16 %v250_v21, %v249_v20  ;;  %v549_v25 = vpack.c.bf16 %v252_v24, %v251_v23  ;;  %v236_v26 = vld [vmem:[%s964_s4] sm:$0xff]  ;;  %p695_p6 = pnand %p694_p4, %p905_p10  ;;  %s699_s8 = scalar_lea.vmem %s698_s7, 256 }
  0x61   : > { %v470_v27 = vld [vmem:[%s1035_s2] ss:$0 sm:$0xff]  ;;  %p700_p12 = scmp.lt.s32.totalorder %s986_s10, %s698_s7  ;;  %p701_p11 = scmp.lt.s32.totalorder %s699_s8, %s693_s26 }
  0x62   : > { %532 = vmatpush3.bf16.msra.mxu0 %v531_v7  ;;  %p696_p8 = pneg %p695_p6 }
  0x63   : > { %533 = vmatprep.subr.bf16.mxu0 %v785_v0  ;;  %p702_p0 = por %p701_p11, %p700_p12 }
  0x65   : > { %p703_p5 = pnand %p702_p0, %p696_p8 }
  0x66   : > { %535 = vmatpush3.bf16.msra.mxu0 %v534_v10 }
  0x67   : > { %536 = vmatprep.subr.bf16.mxu0 %v785_v0 }
  0x6a   : > { %538 = vmatpush3.bf16.msra.mxu0 %v537_v13 }
  0x6b   : > { %539 = vmatprep.subr.bf16.mxu0 %v785_v0 }
  0x6e   : > { %541 = vmatpush3.bf16.msra.mxu0 %v540_v16 }
  0x6f   : > { %542 = vmatprep.subr.bf16.mxu0 %v785_v0 }
  0x72   : > { %544 = vmatpush3.bf16.msra.mxu0 %v543_v19 }
  0x73   : > { %545 = vmatprep.subr.bf16.mxu0 %v785_v0 }
  0x76   : > { %547 = vmatpush3.bf16.msra.mxu0 %v546_v22 }
  0x77   : > { %548 = vmatprep.subr.bf16.mxu0 %v785_v0 }
  0x7a   : > { %550 = vmatpush3.bf16.msra.mxu0 %v549_v25 }
  0x7d   : > { %525 = vmatmul.mubr.f32.vlgmr.msra.gmra.mrb[0].mxu0 %v236_v26 }
 0x150   : > { %v326_v28 = vpop.f32.mrb[0].mxu0 }
 0x151   : > { %v327_v29 = vadd.f32 %v470_v27, %v326_v28  ;;  %v526_v30 = vpop.f32.mrb[1].mxu0 }
 0x153   : > { %v332_v31 = vsub.f32 0.0, %v327_v29  ;;  %v330_v33 = vmul.f32 30.0, %v327_v29 }
 0x155   : > { %v333_v32 = vmul.f32 1.442695, %v332_v31 }
 0x157   : > { %629 = vpow2.f32 %v333_v32 }
 0x158   : > { %631 = vtanh.f32 %v330_v33 }
 0x161   : > { %v630_v34 = vpop.eup %629 }
 0x162   : > { %v335_v35 = vadd.f32 1.0, %v630_v34  ;;  %v632_v36 = vpop.eup %631 }
 0x163   : > { %v337_v37 = vadd.f32 %v632_v36, %v327_v29 }
 0x164   : > { %633 = vrcp.f32 %v335_v35 }
 0x16e   : > { %v634_v38 = vpop.eup %633 }
 0x16f   : > { %v338_v39 = vmul.f32 %v634_v38, %v337_v37 }
 0x171   : > { %339 = vst [vmem:[%s232_s9] sm:$0xff] %v338_v39 }
 0x172   : > { %706 = shalt.err (!%p703_p5)
}
 0x173   : > { %s707_s21 = scalar_lea.hbm %s984_s29, 128  ;;  %s711_s27 = scalar_lea.hbm %s1036_s3, 256 }
 0x174   : > { %p708_p9 = scmp.ne.s32.totalorder %s984_s29, %s707_s21  ;;  %p712_p7 = scmp.lt.u32.totalorder %s984_s29, %s1036_s3 }
 0x175   : > { %p713_p3 = scmp.lt.u32.totalorder %s711_s27, %s707_s21  ;;  %p715_p4 = scmp.lt.u32.totalorder %s707_s21, %s984_s29 }
 0x176   : > { %p709_p1 = pnand %p708_p9, %p905_p10 }
 0x177   : > { %p714_p13 = por %p713_p3, %p712_p7 }
 0x178   : > { %p710_p2 = pneg %p709_p1 }
 0x179   : > { %p716_p6 = por %p715_p4, %p714_p13 }
 0x17b   : > { %p717_p8 = pnand %p716_p6, %p710_p2 }
 0x17d   : > { %720 = shalt.err (!%p717_p8)
}
 0x17e   : > { %557 = dma.vmem_to_hbm [thread:$0]  (%p905_p10), %s986_s10, 128, %s984_s29, %s341_s6  }
 0x17f PF: > { %s367_s22 = sand.u32 1, %s759_s12   ;;  %p1054_p12 = scmp.ne.s32.totalorder %s1044_s23, 0 }
 0x180   : > { %p1055_p11 = scmp.ge.s32.totalorder %s779_s17, 2  ;;  %s368_s24 = scalar_lea.sflag [#allocation4], %s367_s22 }
 0x182   : > { %p568_p0 = pnand %p1055_p11, %p1054_p12 }
 0x184   : > { %754 = dma.done.wait (!%p568_p0), %s368_s24, 128  }
 0x185   : > { %756 = vsyncadd (!%p568_p0), %s368_s24, 4294967168  ;;  %s20_s17 = sadd.s32 1, %s779_s17   ;;  %s1056_s12 = smov %s763_s13 }
 0x186   : > { %p17_p5 = scmp.ge.s32.totalorder %s20_s17, 4   ;;  %s1057_s13 = smov %s767_s14 }
 0x187   : > { %s1058_s14 = smov %s914_s5  ;;  %s1059_s15 = smov %s775_s16 }
 0x188   : > { %s1060_s16 = smov %s1062_s28  ;;  %19 = sbr.rel (!%p17_p5) target bundleno = 7 (0x7), region = 85 }
 0x18f   :  { %373 = vsyncpa [#allocation3], 1 }
 0x190   :  { %375 = vsyncpa [#allocation3 + $0x1], 1 }
 0x191   :  { %376 = vsyncpa [#allocation6], 1 }
 0x192   :  { %377 = vsyncpa [#allocation4], 1 }
 0x193   :  { %379 = vsyncpa [#allocation4 + $0x1], 1 }

</bundles_post_ra>
